<compile_context>
chip_gen: v6e
topology: v6e:2x2x1
jax: 0.10.0
libtpu: 0.0.40
codegen_flags: <defaults>
</compile_context>

<pallas_src>
import functools
import math

import numpy as np
import jax
import jax.numpy as jnp
from jax import lax
from jax.experimental import pallas as pl
from jax.experimental.pallas import tpu as pltpu


def _conv1d_gn_mish_kernel(x_ref, w_ref, b_ref, g_ref, beta_ref, hpos_ref,
                           gmat_ref, o_ref, *, K, H, pad, eps, stacked):
    # x_ref:    (C_in, NB)        fused (batch_tile * horizon) lane axis
    # w_ref:    (C_out, K*C_in)   stacked taps      [stacked=True]
    #           (K, C_out, C_in)  tap-major weights [stacked=False]
    # b_ref:    (C_out, 1)        conv bias
    # g_ref:    (C_out, 1)        GroupNorm gamma
    # beta_ref: (C_out, 1)        GroupNorm beta
    # hpos_ref: (1, NB) int32     column -> position within its batch segment
    # gmat_ref: (C_out, C_out)    within-group averaging matrix, pre-scaled 1/(cpg*H)
    # o_ref:    (C_out, NB)
    C_in, NB = x_ref.shape
    C_out = o_ref.shape[0]
    Bt = NB // H

    x = x_ref[...]
    hpos = hpos_ref[...]

    def tap(k):
        # Tap k needs x at fused position p + (k - pad), staying inside the
        # batch segment.  pltpu.roll is a lane rotation (XLU, lane-aligned);
        # the hpos mask zeroes exactly the columns contaminated by the
        # circular wrap / segment crossing.  The center tap is x itself.
        if k == pad:
            return x
        xk = pltpu.roll(x, shift=(pad - k) % NB, axis=1)
        lo = pad - k
        mask = (hpos >= lo) & (hpos < H + lo)
        return jnp.where(mask, xk, jnp.zeros_like(xk))

    # ---- Conv1d -----------------------------------------------------------
    if stacked:
        # Small C_in: one MXU push with a K*C_in-deep contraction.
        xcat = jnp.concatenate([tap(k) for k in range(K)], axis=0)
        conv = jnp.dot(w_ref[...], xcat,
                       preferred_element_type=jnp.float32) + b_ref[...]
    else:
        acc = jnp.zeros((C_out, NB), jnp.float32)
        for k in range(K):
            acc = acc + jnp.dot(w_ref[k], tap(k),
                                preferred_element_type=jnp.float32)
        conv = acc + b_ref[...]

    # ---- GroupNorm (scale/offset form) --------------------------------------
    # Per (batch element, group) statistics via small selection matmuls; the
    # 0/1 selection matrices are generated from iotas (multiply + compare), so
    # nothing quadratic travels over HBM or sits double-buffered in VMEM.
    jj = lax.broadcasted_iota(jnp.int32, (NB, Bt), 0)
    bb = lax.broadcasted_iota(jnp.int32, (NB, Bt), 1)
    sel = ((jj >= bb * H) & (jj < (bb + 1) * H)).astype(jnp.float32)     # (NB, Bt)
    jjt = lax.broadcasted_iota(jnp.int32, (Bt, NB), 1)
    bbt = lax.broadcasted_iota(jnp.int32, (Bt, NB), 0)
    selt = ((jjt >= bbt * H) & (jjt < (bbt + 1) * H)).astype(jnp.float32)  # (Bt, NB)
    gmat = gmat_ref[...]                                                  # (C_out, C_out)

    sum_cb = jnp.dot(conv, sel, preferred_element_type=jnp.float32)          # (C_out, Bt)
    sumsq_cb = jnp.dot(conv * conv, sel, preferred_element_type=jnp.float32)
    mean_cb = jnp.dot(gmat, sum_cb, preferred_element_type=jnp.float32)      # group mean / chan
    meansq_cb = jnp.dot(gmat, sumsq_cb, preferred_element_type=jnp.float32)
    var_cb = jnp.maximum(meansq_cb - mean_cb * mean_cb, 0.0)  # clamp E[x^2]-mu^2 cancellation
    scale_cb = lax.rsqrt(var_cb + eps) * g_ref[...]                           # (C_out, Bt)
    offset_cb = beta_ref[...] - mean_cb * scale_cb
    scale_full = jnp.dot(scale_cb, selt, preferred_element_type=jnp.float32)  # (C_out, NB)
    offset_full = jnp.dot(offset_cb, selt, preferred_element_type=jnp.float32)
    y = conv * scale_full + offset_full

    # ---- Mish with a single transcendental ----------------------------------
    # y*tanh(softplus(y)) == y*t/(t+2), t = e*(e+2), e = exp(y); the y > 20
    # branch matches torch's softplus threshold.  (exp underflow below y~-88
    # yields exactly 0 instead of ~-1e-38: negligible.)
    e = jnp.exp(jnp.minimum(y, 20.0))
    t = e * (e + 2.0)
    mish = jnp.where(y > 20.0, y, y * (t / (t + 2.0)))

    o_ref[...] = mish.astype(o_ref.dtype)


def _pick_batch_tile(B_pad, H, m, tile_bytes, target_lanes, vmem_budget):
    """Lane-dense batch tile that fits the VMEM budget; prefers the smallest
    tile reaching target_lanes so large problems split into >= 2 grid steps
    (sharded across v7x's two TensorCores via the "parallel" grid axis)."""
    cands = [d for d in range(m, B_pad + 1, m)
             if B_pad % d == 0 and tile_bytes(d) <= vmem_budget]
    if not cands:
        return m  # minimal lane-dense tile; vmem_limit_bytes leaves headroom
    for d in cands:
        if d * H >= target_lanes:
            return d
    return cands[-1]


@functools.partial(
    jax.jit,
    static_argnames=("n_groups", "eps", "matmul_dtype", "batch_tile",
                     "target_lanes"))
def conv1d_normalized(x, weight, bias, gamma, beta, *, n_groups=8, eps=1e-5,
                      matmul_dtype=jnp.bfloat16, batch_tile=None,
                      target_lanes=2048):
    """Conv1d(pad=K//2) -> GroupNorm(n_groups) -> Mish.

    x: (B, C_in, H); weight: (C_out, C_in, K); bias/gamma/beta: (C_out,).
    Returns (B, C_out, H) in x.dtype.
    """
    B, C_in, H = x.shape
    C_out, C_in_w, K = weight.shape
    assert C_in_w == C_in
    assert C_out % n_groups == 0
    # TODO(synk): even kernel_size (padding=K//2 grows the horizon by 1) is not
    # supported by the fused (batch*horizon) lane layout; odd K keeps H_out == H.
    assert K % 2 == 1, "even kernel_size not supported"
    pad = K // 2
    cpg = C_out // n_groups
    in_isz = jnp.dtype(matmul_dtype).itemsize
    out_isz = jnp.dtype(x.dtype).itemsize

    # Pad the batch so every tile's lane width is a multiple of 128
    # (lane-dense unmasked stores; clean (8,128)-divisible block shapes).
    m = 128 // math.gcd(H, 128)
    B_pad = ((B + m - 1) // m) * m

    stacked = C_in < 128   # fuse K taps into one MXU contraction when C_in is small

    def tile_bytes(bt):
        nb = bt * H
        return (2 * C_in * nb * in_isz                      # double-buffered x tile
                + 2 * C_out * nb * out_isz                  # double-buffered out tile
                + 4 * C_out * nb * 4                        # live f32 temporaries
                + (K if stacked else 1) * C_in * nb * in_isz  # stacked taps
                + 4 * nb * bt * 4)                          # sel/selt + iota temporaries

    if batch_tile is None:
        # ~24 MiB tile budget keeps 2-deep pipelining inside v7x's 64 MiB VMEM.
        batch_tile = _pick_batch_tile(B_pad, H, m, tile_bytes,
                                      target_lanes, vmem_budget=24 << 20)
    assert B_pad % batch_tile == 0
    NB = batch_tile * H
    n_tiles = B_pad // batch_tile

    # Channel-major, batch-fused layout; fuses into the surrounding jit and
    # the batch pad is free when B is already a multiple of `m`.
    if B_pad != B:
        x = jnp.concatenate([x, jnp.zeros((B_pad - B, C_in, H), x.dtype)], axis=0)
    x2 = jnp.transpose(x, (1, 0, 2)).reshape(C_in, B_pad * H).astype(matmul_dtype)

    if stacked:
        w2 = jnp.transpose(weight, (0, 2, 1)).reshape(C_out, K * C_in)
        w2 = w2.astype(matmul_dtype)                                    # (C_out, K*C_in)
        w_spec = pl.BlockSpec((C_out, K * C_in), lambda t: (0, 0))
    else:
        w2 = jnp.transpose(weight, (2, 0, 1)).astype(matmul_dtype)      # (K, C_out, C_in)
        w_spec = pl.BlockSpec((K, C_out, C_in), lambda t: (0, 0, 0))
    b2 = bias.reshape(C_out, 1).astype(jnp.float32)
    g2 = gamma.reshape(C_out, 1).astype(jnp.float32)
    beta2 = beta.reshape(C_out, 1).astype(jnp.float32)

    # Tiny grid-constant helpers (baked once under jit; no quadratic payloads).
    hpos = np.tile(np.arange(H, dtype=np.int32), batch_tile).reshape(1, NB)
    cidx = np.arange(C_out)
    gmat = (((cidx[:, None] // cpg) == (cidx[None, :] // cpg))
            .astype(np.float32) / float(cpg * H))                       # (C_out, C_out)

    kernel = functools.partial(_conv1d_gn_mish_kernel, K=K, H=H, pad=pad,
                               eps=eps, stacked=stacked)

    out2 = pl.pallas_call(
        kernel,
        out_shape=jax.ShapeDtypeStruct((C_out, B_pad * H), x.dtype),
        grid_spec=pltpu.PrefetchScalarGridSpec(
            num_scalar_prefetch=0,
            grid=(n_tiles,),
            in_specs=[
                pl.BlockSpec((C_in, NB), lambda t: (0, t)),
                w_spec,
                pl.BlockSpec((C_out, 1), lambda t: (0, 0)),
                pl.BlockSpec((C_out, 1), lambda t: (0, 0)),
                pl.BlockSpec((C_out, 1), lambda t: (0, 0)),
                pl.BlockSpec((1, NB), lambda t: (0, 0)),
                pl.BlockSpec((C_out, C_out), lambda t: (0, 0)),
            ],
            out_specs=pl.BlockSpec((C_out, NB), lambda t: (0, t)),
        ),
        compiler_params=pltpu.CompilerParams(
            dimension_semantics=("parallel",),        # batch tiles shard across v7x TCs
            vmem_limit_bytes=48 * 1024 * 1024),       # explicit (v5e scoped default 16 MiB)
    )(x2, w2, b2, g2, beta2, jnp.asarray(hpos), jnp.asarray(gmat))

    out = jnp.transpose(out2.reshape(C_out, B_pad, H), (1, 0, 2))
    return out[:B] if B_pad != B else out


def _reference(x, weight, bias, gamma, beta, n_groups=8, eps=1e-5):
    pad = weight.shape[-1] // 2
    conv = lax.conv_general_dilated(
        x, weight, window_strides=(1,), padding=[(pad, pad)],
        dimension_numbers=("NCH", "OIH", "NCH")) + bias[None, :, None]
    B, C, H = conv.shape
    g = conv.reshape(B, n_groups, -1)
    mean = g.mean(axis=-1, keepdims=True)
    var = ((g - mean) ** 2).mean(axis=-1, keepdims=True)
    normed = ((g - mean) / jnp.sqrt(var + eps)).reshape(B, C, H)
    y = normed * gamma[None, :, None] + beta[None, :, None]
    return y * jnp.tanh(jnp.log1p(jnp.exp(y)))


if __name__ == "__main__":
    # Small shapes consistent with the module: batch=2, C_in=4, C_out=8,
    # kernel_size=5 (odd => 'same' horizon), horizon=16, n_groups=8.
    B, C_in, C_out, K, H, n_groups = 2, 4, 8, 5, 16, 8

    key = jax.random.PRNGKey(0)
    kx, kw, kb, kg, kbeta = jax.random.split(key, 5)
    x = jax.random.normal(kx, (B, C_in, H), dtype=jnp.float32)
    weight = jax.random.normal(kw, (C_out, C_in, K), dtype=jnp.float32) * 0.2
    bias = jax.random.normal(kb, (C_out,), dtype=jnp.float32) * 0.1
    gamma = 1.0 + 0.1 * jax.random.normal(kg, (C_out,), dtype=jnp.float32)
    beta = 0.1 * jax.random.normal(kbeta, (C_out,), dtype=jnp.float32)

    ref = _reference(x, weight, bias, gamma, beta, n_groups=n_groups)

    # f32 matmul path: tight check against the XLA reference.
    out_f32 = jax.block_until_ready(
        conv1d_normalized(x, weight, bias, gamma, beta, n_groups=n_groups,
                          matmul_dtype=jnp.float32))
    assert out_f32.shape == (B, C_out, H), out_f32.shape
    assert jnp.allclose(out_f32, ref, rtol=1e-3, atol=1e-3), "f32 mismatch vs reference"

    # Default bf16-operand matmul path (v6e/v7x MXU throughput); loose check.
    out_bf16 = jax.block_until_ready(
        conv1d_normalized(x, weight, bias, gamma, beta, n_groups=n_groups))
    assert out_bf16.shape == (B, C_out, H), out_bf16.shape
    assert jnp.allclose(out_bf16, ref, rtol=1e-1, atol=1e-1), "bf16 mismatch vs reference"

    print("KERNEL_OK")
</pallas_src>

<mosaic_0001>
module attributes {stable_mosaic.version = 11 : i64} {
  func.func @_conv1d_gn_mish_kernel(%arg0: i32, %arg1: memref<4x128xf32, #tpu.memory_space<vmem>>, %arg2: memref<8x20xf32, #tpu.memory_space<vmem>>, %arg3: memref<8x1xf32, #tpu.memory_space<vmem>>, %arg4: memref<8x1xf32, #tpu.memory_space<vmem>>, %arg5: memref<8x1xf32, #tpu.memory_space<vmem>>, %arg6: memref<1x128xi32, #tpu.memory_space<vmem>>, %arg7: memref<8x8xf32, #tpu.memory_space<vmem>>, %arg8: memref<8x128xf32, #tpu.memory_space<vmem>>) attributes {dimension_semantics = [#tpu.dimension_semantics<parallel>], iteration_bounds = array<i64: 1>, scalar_prefetch = 0 : i64, scratch_operands = 0 : i64, tpu.core_type = #tpu.core_type<tc>, window_params = [{transform_indices = @transform_0, window_bounds = array<i64: 4, 128>}, {pipeline_mode = #tpu.pipeline_mode<synchronous>, transform_indices = @transform_1, window_bounds = array<i64: 8, 20>}, {pipeline_mode = #tpu.pipeline_mode<synchronous>, transform_indices = @transform_2, window_bounds = array<i64: 8, 1>}, {pipeline_mode = #tpu.pipeline_mode<synchronous>, transform_indices = @transform_3, window_bounds = array<i64: 8, 1>}, {pipeline_mode = #tpu.pipeline_mode<synchronous>, transform_indices = @transform_4, window_bounds = array<i64: 8, 1>}, {pipeline_mode = #tpu.pipeline_mode<synchronous>, transform_indices = @transform_5, window_bounds = array<i64: 1, 128>}, {pipeline_mode = #tpu.pipeline_mode<synchronous>, transform_indices = @transform_6, window_bounds = array<i64: 8, 8>}, {transform_indices = @transform_7, window_bounds = array<i64: 8, 128>}]} {
    %c0 = arith.constant 0 : index
    %c0_0 = arith.constant 0 : index
    %0 = vector.load %arg1[%c0, %c0_0] : memref<4x128xf32, #tpu.memory_space<vmem>>, vector<4x128xf32>
    %c0_1 = arith.constant 0 : index
    %c0_2 = arith.constant 0 : index
    %1 = vector.load %arg6[%c0_1, %c0_2] : memref<1x128xi32, #tpu.memory_space<vmem>>, vector<1x128xi32>
    %c2_i32 = arith.constant 2 : i32
    %2 = tpu.dynamic_rotate %0 by %c2_i32 dim 1 : vector<4x128xf32>, i32 -> vector<4x128xf32>
    %c2_i32_3 = arith.constant 2 : i32
    %3 = vector.broadcast %c2_i32_3 : i32 to vector<1x128xi32>
    %4 = arith.cmpi sge, %1, %3 : vector<1x128xi32>
    %c18_i32 = arith.constant 18 : i32
    %5 = vector.broadcast %c18_i32 : i32 to vector<1x128xi32>
    %6 = arith.cmpi slt, %1, %5 : vector<1x128xi32>
    %7 = arith.andi %4, %6 : vector<1x128xi1>
    %cst = arith.constant 0.000000e+00 : f32
    %8 = vector.broadcast %cst : f32 to vector<4x128xf32>
    %9 = vector.shape_cast %7 : vector<1x128xi1> to vector<1x128xi1>
    %10 = vector.broadcast %9 : vector<1x128xi1> to vector<4x128xi1>
    %11 = arith.select %10, %2, %8 : vector<4x128xi1>, vector<4x128xf32>
    %c1_i32 = arith.constant 1 : i32
    %12 = tpu.dynamic_rotate %0 by %c1_i32 dim 1 : vector<4x128xf32>, i32 -> vector<4x128xf32>
    %c1_i32_4 = arith.constant 1 : i32
    %13 = vector.broadcast %c1_i32_4 : i32 to vector<1x128xi32>
    %14 = arith.cmpi sge, %1, %13 : vector<1x128xi32>
    %c17_i32 = arith.constant 17 : i32
    %15 = vector.broadcast %c17_i32 : i32 to vector<1x128xi32>
    %16 = arith.cmpi slt, %1, %15 : vector<1x128xi32>
    %17 = arith.andi %14, %16 : vector<1x128xi1>
    %cst_5 = arith.constant 0.000000e+00 : f32
    %18 = vector.broadcast %cst_5 : f32 to vector<4x128xf32>
    %19 = vector.shape_cast %17 : vector<1x128xi1> to vector<1x128xi1>
    %20 = vector.broadcast %19 : vector<1x128xi1> to vector<4x128xi1>
    %21 = arith.select %20, %12, %18 : vector<4x128xi1>, vector<4x128xf32>
    %c127_i32 = arith.constant 127 : i32
    %22 = tpu.dynamic_rotate %0 by %c127_i32 dim 1 : vector<4x128xf32>, i32 -> vector<4x128xf32>
    %c-1_i32 = arith.constant -1 : i32
    %23 = vector.broadcast %c-1_i32 : i32 to vector<1x128xi32>
    %24 = arith.cmpi sge, %1, %23 : vector<1x128xi32>
    %c15_i32 = arith.constant 15 : i32
    %25 = vector.broadcast %c15_i32 : i32 to vector<1x128xi32>
    %26 = arith.cmpi slt, %1, %25 : vector<1x128xi32>
    %27 = arith.andi %24, %26 : vector<1x128xi1>
    %cst_6 = arith.constant 0.000000e+00 : f32
    %28 = vector.broadcast %cst_6 : f32 to vector<4x128xf32>
    %29 = vector.shape_cast %27 : vector<1x128xi1> to vector<1x128xi1>
    %30 = vector.broadcast %29 : vector<1x128xi1> to vector<4x128xi1>
    %31 = arith.select %30, %22, %28 : vector<4x128xi1>, vector<4x128xf32>
    %c126_i32 = arith.constant 126 : i32
    %32 = tpu.dynamic_rotate %0 by %c126_i32 dim 1 : vector<4x128xf32>, i32 -> vector<4x128xf32>
    %c-2_i32 = arith.constant -2 : i32
    %33 = vector.broadcast %c-2_i32 : i32 to vector<1x128xi32>
    %34 = arith.cmpi sge, %1, %33 : vector<1x128xi32>
    %c14_i32 = arith.constant 14 : i32
    %35 = vector.broadcast %c14_i32 : i32 to vector<1x128xi32>
    %36 = arith.cmpi slt, %1, %35 : vector<1x128xi32>
    %37 = arith.andi %34, %36 : vector<1x128xi1>
    %cst_7 = arith.constant 0.000000e+00 : f32
    %38 = vector.broadcast %cst_7 : f32 to vector<4x128xf32>
    %39 = vector.shape_cast %37 : vector<1x128xi1> to vector<1x128xi1>
    %40 = vector.broadcast %39 : vector<1x128xi1> to vector<4x128xi1>
    %41 = arith.select %40, %32, %38 : vector<4x128xi1>, vector<4x128xf32>
    %42 = tpu.concatenate %11, %21, %0, %31, %41 in 0 : vector<4x128xf32>, vector<4x128xf32>, vector<4x128xf32>, vector<4x128xf32>, vector<4x128xf32> -> vector<20x128xf32>
    %c0_8 = arith.constant 0 : index
    %c0_9 = arith.constant 0 : index
    %43 = vector.load %arg2[%c0_8, %c0_9] : memref<8x20xf32, #tpu.memory_space<vmem>>, vector<8x20xf32>
    %cst_10 = arith.constant dense<0.000000e+00> : vector<8x128xf32>
    %44 = tpu.matmul %43, %42, %cst_10 {dimension_numbers = #tpu.dot_dimension_numbers<[1], [0], [0], [1], [0, 0, 1, 1], [], []>} : vector<8x20xf32>, vector<20x128xf32>, vector<8x128xf32> -> vector<8x128xf32>
    %c0_11 = arith.constant 0 : index
    %c0_12 = arith.constant 0 : index
    %45 = vector.load %arg3[%c0_11, %c0_12] : memref<8x1xf32, #tpu.memory_space<vmem>>, vector<8x1xf32>
    %46 = vector.broadcast %45 : vector<8x1xf32> to vector<8x128xf32>
    %47 = arith.addf %44, %46 : vector<8x128xf32>
    %48 = tpu.iota {dimensions = array<i32: 0>} : vector<128x8xi32>
    %49 = tpu.iota {dimensions = array<i32: 1>} : vector<128x8xi32>
    %c16_i32 = arith.constant 16 : i32
    %50 = vector.broadcast %c16_i32 : i32 to vector<128x8xi32>
    %51 = arith.muli %49, %50 : vector<128x8xi32>
    %52 = arith.cmpi sge, %48, %51 : vector<128x8xi32>
    %c1_i32_13 = arith.constant 1 : i32
    %53 = vector.broadcast %c1_i32_13 : i32 to vector<128x8xi32>
    %54 = arith.addi %49, %53 : vector<128x8xi32>
    %c16_i32_14 = arith.constant 16 : i32
    %55 = vector.broadcast %c16_i32_14 : i32 to vector<128x8xi32>
    %56 = arith.muli %54, %55 : vector<128x8xi32>
    %57 = arith.cmpi slt, %48, %56 : vector<128x8xi32>
    %58 = arith.andi %52, %57 : vector<128x8xi1>
    %59 = arith.extui %58 : vector<128x8xi1> to vector<128x8xi32>
    %60 = arith.sitofp %59 : vector<128x8xi32> to vector<128x8xf32>
    %61 = tpu.iota {dimensions = array<i32: 1>} : vector<8x128xi32>
    %62 = tpu.iota {dimensions = array<i32: 0>} : vector<8x128xi32>
    %c16_i32_15 = arith.constant 16 : i32
    %63 = vector.broadcast %c16_i32_15 : i32 to vector<8x128xi32>
    %64 = arith.muli %62, %63 : vector<8x128xi32>
    %65 = arith.cmpi sge, %61, %64 : vector<8x128xi32>
    %c1_i32_16 = arith.constant 1 : i32
    %66 = vector.broadcast %c1_i32_16 : i32 to vector<8x128xi32>
    %67 = arith.addi %62, %66 : vector<8x128xi32>
    %c16_i32_17 = arith.constant 16 : i32
    %68 = vector.broadcast %c16_i32_17 : i32 to vector<8x128xi32>
    %69 = arith.muli %67, %68 : vector<8x128xi32>
    %70 = arith.cmpi slt, %61, %69 : vector<8x128xi32>
    %71 = arith.andi %65, %70 : vector<8x128xi1>
    %72 = arith.extui %71 : vector<8x128xi1> to vector<8x128xi32>
    %73 = arith.sitofp %72 : vector<8x128xi32> to vector<8x128xf32>
    %c0_18 = arith.constant 0 : index
    %c0_19 = arith.constant 0 : index
    %74 = vector.load %arg7[%c0_18, %c0_19] : memref<8x8xf32, #tpu.memory_space<vmem>>, vector<8x8xf32>
    %cst_20 = arith.constant dense<0.000000e+00> : vector<8x8xf32>
    %75 = tpu.matmul %47, %60, %cst_20 {dimension_numbers = #tpu.dot_dimension_numbers<[1], [0], [0], [1], [0, 0, 1, 1], [], []>} : vector<8x128xf32>, vector<128x8xf32>, vector<8x8xf32> -> vector<8x8xf32>
    %76 = arith.mulf %47, %47 : vector<8x128xf32>
    %cst_21 = arith.constant dense<0.000000e+00> : vector<8x8xf32>
    %77 = tpu.matmul %76, %60, %cst_21 {dimension_numbers = #tpu.dot_dimension_numbers<[1], [0], [0], [1], [0, 0, 1, 1], [], []>} : vector<8x128xf32>, vector<128x8xf32>, vector<8x8xf32> -> vector<8x8xf32>
    %cst_22 = arith.constant dense<0.000000e+00> : vector<8x8xf32>
    %78 = tpu.matmul %74, %75, %cst_22 {dimension_numbers = #tpu.dot_dimension_numbers<[1], [0], [0], [1], [0, 0, 1, 1], [], []>} : vector<8x8xf32>, vector<8x8xf32>, vector<8x8xf32> -> vector<8x8xf32>
    %cst_23 = arith.constant dense<0.000000e+00> : vector<8x8xf32>
    %79 = tpu.matmul %74, %77, %cst_23 {dimension_numbers = #tpu.dot_dimension_numbers<[1], [0], [0], [1], [0, 0, 1, 1], [], []>} : vector<8x8xf32>, vector<8x8xf32>, vector<8x8xf32> -> vector<8x8xf32>
    %80 = arith.mulf %78, %78 : vector<8x8xf32>
    %81 = arith.subf %79, %80 : vector<8x8xf32>
    %cst_24 = arith.constant 0.000000e+00 : f32
    %82 = vector.broadcast %cst_24 : f32 to vector<8x8xf32>
    %83 = arith.maximumf %81, %82 : vector<8x8xf32>
    %cst_25 = arith.constant 9.99999974E-6 : f32
    %84 = vector.broadcast %cst_25 : f32 to vector<8x8xf32>
    %85 = arith.addf %83, %84 : vector<8x8xf32>
    %86 = math.rsqrt %85 : vector<8x8xf32>
    %c0_26 = arith.constant 0 : index
    %c0_27 = arith.constant 0 : index
    %87 = vector.load %arg4[%c0_26, %c0_27] : memref<8x1xf32, #tpu.memory_space<vmem>>, vector<8x1xf32>
    %88 = vector.broadcast %87 : vector<8x1xf32> to vector<8x8xf32>
    %89 = arith.mulf %86, %88 : vector<8x8xf32>
    %c0_28 = arith.constant 0 : index
    %c0_29 = arith.constant 0 : index
    %90 = vector.load %arg5[%c0_28, %c0_29] : memref<8x1xf32, #tpu.memory_space<vmem>>, vector<8x1xf32>
    %91 = arith.mulf %78, %89 : vector<8x8xf32>
    %92 = vector.broadcast %90 : vector<8x1xf32> to vector<8x8xf32>
    %93 = arith.subf %92, %91 : vector<8x8xf32>
    %cst_30 = arith.constant dense<0.000000e+00> : vector<8x128xf32>
    %94 = tpu.matmul %89, %73, %cst_30 {dimension_numbers = #tpu.dot_dimension_numbers<[1], [0], [0], [1], [0, 0, 1, 1], [], []>} : vector<8x8xf32>, vector<8x128xf32>, vector<8x128xf32> -> vector<8x128xf32>
    %cst_31 = arith.constant dense<0.000000e+00> : vector<8x128xf32>
    %95 = tpu.matmul %93, %73, %cst_31 {dimension_numbers = #tpu.dot_dimension_numbers<[1], [0], [0], [1], [0, 0, 1, 1], [], []>} : vector<8x8xf32>, vector<8x128xf32>, vector<8x128xf32> -> vector<8x128xf32>
    %96 = arith.mulf %47, %94 : vector<8x128xf32>
    %97 = arith.addf %96, %95 : vector<8x128xf32>
    %cst_32 = arith.constant 2.000000e+01 : f32
    %98 = vector.broadcast %cst_32 : f32 to vector<8x128xf32>
    %99 = arith.minimumf %97, %98 : vector<8x128xf32>
    %100 = math.exp %99 : vector<8x128xf32>
    %cst_33 = arith.constant 2.000000e+00 : f32
    %101 = vector.broadcast %cst_33 : f32 to vector<8x128xf32>
    %102 = arith.addf %100, %101 : vector<8x128xf32>
    %103 = arith.mulf %100, %102 : vector<8x128xf32>
    %cst_34 = arith.constant 2.000000e+01 : f32
    %104 = vector.broadcast %cst_34 : f32 to vector<8x128xf32>
    %105 = arith.cmpf ogt, %97, %104 : vector<8x128xf32>
    %cst_35 = arith.constant 2.000000e+00 : f32
    %106 = vector.broadcast %cst_35 : f32 to vector<8x128xf32>
    %107 = arith.addf %103, %106 : vector<8x128xf32>
    %108 = arith.divf %103, %107 : vector<8x128xf32>
    %109 = arith.mulf %97, %108 : vector<8x128xf32>
    %110 = arith.select %105, %97, %109 : vector<8x128xi1>, vector<8x128xf32>
    %c0_36 = arith.constant 0 : index
    %c0_37 = arith.constant 0 : index
    %111 = vector.load %arg8[%c0_36, %c0_37] : memref<8x128xf32, #tpu.memory_space<vmem>>, vector<8x128xf32>
    tpu.vector_store %arg8[%c0_36, %c0_37], %110 {strides = array<i32>} : memref<8x128xf32, #tpu.memory_space<vmem>>, vector<8x128xf32>,
    return
  }
  func.func @transform_0(%arg0: i32) -> (i32, i32) {
    %c0_i32 = arith.constant 0 : i32
    %c0_i32_0 = arith.constant 0 : i32
    return %c0_i32, %arg0 : i32, i32
  }
  func.func @transform_1(%arg0: i32) -> (i32, i32) {
    %c0_i32 = arith.constant 0 : i32
    %c0_i32_0 = arith.constant 0 : i32
    %c0_i32_1 = arith.constant 0 : i32
    return %c0_i32, %c0_i32_0 : i32, i32
  }
  func.func @transform_2(%arg0: i32) -> (i32, i32) {
    %c0_i32 = arith.constant 0 : i32
    %c0_i32_0 = arith.constant 0 : i32
    %c0_i32_1 = arith.constant 0 : i32
    return %c0_i32, %c0_i32_0 : i32, i32
  }
  func.func @transform_3(%arg0: i32) -> (i32, i32) {
    %c0_i32 = arith.constant 0 : i32
    %c0_i32_0 = arith.constant 0 : i32
    %c0_i32_1 = arith.constant 0 : i32
    return %c0_i32, %c0_i32_0 : i32, i32
  }
  func.func @transform_4(%arg0: i32) -> (i32, i32) {
    %c0_i32 = arith.constant 0 : i32
    %c0_i32_0 = arith.constant 0 : i32
    %c0_i32_1 = arith.constant 0 : i32
    return %c0_i32, %c0_i32_0 : i32, i32
  }
  func.func @transform_5(%arg0: i32) -> (i32, i32) {
    %c0_i32 = arith.constant 0 : i32
    %c0_i32_0 = arith.constant 0 : i32
    %c0_i32_1 = arith.constant 0 : i32
    return %c0_i32, %c0_i32_0 : i32, i32
  }
  func.func @transform_6(%arg0: i32) -> (i32, i32) {
    %c0_i32 = arith.constant 0 : i32
    %c0_i32_0 = arith.constant 0 : i32
    %c0_i32_1 = arith.constant 0 : i32
    return %c0_i32, %c0_i32_0 : i32, i32
  }
  func.func @transform_7(%arg0: i32) -> (i32, i32) {
    %c0_i32 = arith.constant 0 : i32
    %c0_i32_0 = arith.constant 0 : i32
    return %c0_i32, %arg0 : i32, i32
  }
}

</mosaic_0001>

<bundles_post_ra>
// kernel: conv1d_normalized.1
= control target key start
LH: loop header
LB: loop body
LE: loop exit
PB: predicated region body
PF: predicated region fallthrough
CT: control target
= control target key end

     0   :  { %v34_v0 = vlaneseq  ;;  %v967_v2 = vmov 0.0   ;;  %v968_v3 = vmov 0   ;;  %s969_s26 = smov 127   ;;  %s970_s27 = smov 1   ;;  %vm1333_vm0 = vmmov 0   ;;  %s1325_s0 = inlined_call_operand.vmem [shape: f32[4,128], index: 0, kind: input, shape index: {}]   ;;  %s1326_s2 = inlined_call_operand.vmem [shape: f32[8,1], index: 2, kind: input, shape index: {}]   ;;  %s1327_s5 = inlined_call_operand.vmem [shape: s32[1,128], index: 5, kind: input, shape index: {}]   ;;  %s1328_s1 = inlined_call_operand.vmem [shape: f32[8,20], index: 1, kind: input, shape index: {}]   ;;  %s1329_s3 = inlined_call_operand.vmem [shape: f32[8,1], index: 3, kind: input, shape index: {}]   ;;  %s1330_s4 = inlined_call_operand.vmem [shape: f32[8,1], index: 4, kind: input, shape index: {}]   ;;  %s1331_s6 = inlined_call_operand.vmem [shape: f32[8,8], index: 6, kind: input, shape index: {}]   ;;  %s1332_s7 = inlined_call_operand.vmem [shape: f32[8,128], index: 7, kind: output, shape index: {}]  }
   0x1   :  { %v1018_v1 = vld [vmem:[%s1325_s0] sm:$0xf]  ;;  %852 = vmatprep.subr.mxu0 %v967_v2  ;;  %959 = vset.pattern.permute.xlu0 %v968_v3  ;;  %s972_s0 = smov 126   ;;  %s973_s28 = smov 2   ;;  %v974_v16 = vmov 1.0   ;;  %v1353_v23 = vmov 0 }
   0x2   :  { %52 = vrot.lane.b32.xlu0 %v1018_v1, %s969_s26  ;;  %40 = vrot.lane.b32.xlu1 %v1018_v1, %s970_s27  ;;  %v1024_v4 = vshrl.u32 %v34_v0, 7  ;;  %v1031_v6 = vand.u32 127, %v34_v0  ;;  %v86_v7 = vld [vmem:[%s1326_s2] sm:$0xff]  ;;  %v1355_v25 = vmov 0  ;;  %v1357_v27 = vmov 0 }
   0x3   :  { %861 = vmatprep.subr.mxu1 %v967_v2  ;;  %960 = vset.pattern.permute.xlu1 %v968_v3  ;;  %v1359_v29 = vmov 0  ;;  %v1361_v31 = vmov 0  ;;  %v1363_v33 = vmov 0  ;;  %v1365_v35 = vmov 0  ;;  %v27_v39 = vld [vmem:[%s1327_s5] sm:$0x1] }
   0x4   :  { %858 = vmatprep.mubr.msk.f32.mxu0 %vm1333_vm0, %v967_v2  ;;  %v185_v5 = vadd.s32 120, %v1024_v4  ;;  %893 = vmatprep.mubr.msk.f32.mxu1 %vm1333_vm0, %v967_v2  ;;  %v1041_v8 = vmul.u32 16, %v1031_v6  ;;  %v205_v9 = vadd.s32 1, %v1031_v6  ;;  %v184_v10 = vadd.s32 112, %v1024_v4  ;;  %v85_v61 = vld [vmem:[%s1328_s1] sm:$0xff] }
   0x5   :  { %v183_v12 = vadd.s32 104, %v1024_v4  ;;  %v182_v13 = vadd.s32 96, %v1024_v4  ;;  %v181_v14 = vadd.s32 88, %v1024_v4  ;;  %v180_v18 = vadd.s32 80, %v1024_v4 }
   0x6   :  { %64 = vrot.lane.b32.xlu0 %v1018_v1, %s972_s0  ;;  %28 = vrot.lane.b32.xlu1 %v1018_v1, %s973_s28  ;;  %vm204_vm1 = vcmp.ge.s32.totalorder %v185_v5, %v1041_v8  ;;  %v1046_v11 = vmul.u32 16, %v205_v9  ;;  %vm203_vm2 = vcmp.ge.s32.totalorder %v184_v10, %v1041_v8  ;;  %v179_v20 = vadd.s32 72, %v1024_v4  ;;  %v577_v9 = vld [vmem:[%s1330_s4] sm:$0xff] }
   0x7   :  { %vm202_vm5 = vcmp.ge.s32.totalorder %v183_v12, %v1041_v8  ;;  %vm201_vm9 = vcmp.ge.s32.totalorder %v182_v13, %v1041_v8  ;;  %vm200_vm12 = vcmp.ge.s32.totalorder %v181_v14, %v1041_v8  ;;  %vm199_vm15 = vcmp.ge.s32.totalorder %v180_v18, %v1041_v8 }
   0x8   :  { %vm222_vm3 = vcmp.lt.s32.totalorder %v185_v5, %v1046_v11  ;;  %vm221_vm4 = vcmp.lt.s32.totalorder %v184_v10, %v1046_v11  ;;  %vm220_vm6 = vcmp.lt.s32.totalorder %v183_v12, %v1046_v11  ;;  %vm219_vm10 = vcmp.lt.s32.totalorder %v182_v13, %v1046_v11  ;;  %v279_v10 = vld [vmem:[%s1331_s6] sm:$0xff] }
   0x9   :  { %vm1056_vm7 = vmand %vm204_vm1, %vm222_vm3  ;;  %vm218_vm13 = vcmp.lt.s32.totalorder %v181_v14, %v1046_v11  ;;  %vm217_vm1 = vcmp.lt.s32.totalorder %v180_v18, %v1046_v11  ;;  %v178_v22 = vadd.s32 64, %v1024_v4  ;;  %vm198_vm3 = vcmp.ge.s32.totalorder %v179_v20, %v1041_v8 }
   0xa   :  { %89 = vperm.xlu0 %959, %v86_v7   ;;  %862 = vmatpush3.msk.msra.mxu1 %vm1056_vm7, %v974_v16  ;;  %vm1063_vm8 = vmand %vm203_vm2, %vm221_vm4  ;;  %vm216_vm4 = vcmp.lt.s32.totalorder %v179_v20, %v1046_v11  ;;  %v177_v24 = vadd.s32 56, %v1024_v4  ;;  %v176_v26 = vadd.s32 48, %v1024_v4  ;;  %v175_v28 = vadd.s32 40, %v1024_v4 }
   0xb   :  { %863 = vmatprep.subr.mxu1 %v967_v2  ;;  %vm1071_vm11 = vmand %vm202_vm5, %vm220_vm6  ;;  %vm197_vm6 = vcmp.ge.s32.totalorder %v178_v22, %v1041_v8  ;;  %v174_v30 = vadd.s32 32, %v1024_v4  ;;  %v173_v32 = vadd.s32 24, %v1024_v4  ;;  %v172_v34 = vadd.s32 16, %v1024_v4 }
   0xc   :  { %864 = vmatpush3.msk.msra.mxu1 %vm1063_vm8, %v974_v16  ;;  %vm1082_vm14 = vmand %vm201_vm9, %vm219_vm10  ;;  %vm215_vm9 = vcmp.lt.s32.totalorder %v178_v22, %v1046_v11  ;;  %v1367_v36 = vmov 0  ;;  %v1369_v37 = vmov 0  ;;  %v1371_v38 = vmov 0 }
   0xd   :  { %865 = vmatprep.subr.mxu1 %v967_v2  ;;  %vm1093_vm2 = vmand %vm200_vm12, %vm218_vm13  ;;  %vm196_vm12 = vcmp.ge.s32.totalorder %v177_v24, %v1041_v8  ;;  %vm214_vm13 = vcmp.lt.s32.totalorder %v177_v24, %v1046_v11  ;;  %v36_v40 = vsub.s32 0, %v1024_v4  ;;  %v171_v63 = vadd.s32 8, %v1024_v4 }
   0xe   :  { %866 = vmatpush3.msk.msra.mxu1 %vm1071_vm11, %v974_v16  ;;  %v1354_v23 = vsel %vm1093_vm2, 4294967295, %v1353_v23  ;;  %vm1104_vm5 = vmand %vm199_vm15, %vm217_vm1  ;;  %vm195_vm1 = vcmp.ge.s32.totalorder %v176_v26, %v1041_v8  ;;  %v273_v15 = vadd.s32 1, %v1024_v4  ;;  %v271_v17 = vmul.u32 16, %v1024_v4 }
   0xf   :  { %867 = vmatprep.subr.mxu1 %v967_v2  ;;  %v1356_v25 = vsel %vm1104_vm5, 4294967295, %v1355_v25  ;;  %vm1115_vm10 = vmand %vm198_vm3, %vm216_vm4  ;;  %vm213_vm3 = vcmp.lt.s32.totalorder %v176_v26, %v1046_v11 }
  0x10   :  { %868 = vmatpush3.msk.msra.mxu1 %vm1082_vm14, %v974_v16  ;;  %v1358_v27 = vsel %vm1115_vm10, 4294967295, %v1357_v27  ;;  %vm1126_vm15 = vmand %vm197_vm6, %vm215_vm9  ;;  %vm194_vm6 = vcmp.ge.s32.totalorder %v175_v28, %v1041_v8  ;;  %vm212_vm9 = vcmp.lt.s32.totalorder %v175_v28, %v1046_v11  ;;  %v274_v18 = vmul.u32 16, %v273_v15 }
  0x11   :  { %869 = vmatprep.subr.mxu1 %v967_v2  ;;  %v1360_v29 = vsel %vm1126_vm15, 4294967295, %v1359_v29  ;;  %vm1137_vm4 = vmand %vm196_vm12, %vm214_vm13  ;;  %vm193_vm12 = vcmp.ge.s32.totalorder %v174_v30, %v1041_v8  ;;  %vm211_vm13 = vcmp.lt.s32.totalorder %v174_v30, %v1046_v11 }
  0x12   :  { %870 = vmatpush3.msk.msra.mxu1 %vm1093_vm2, %v974_v16  ;;  %v1362_v31 = vsel %vm1137_vm4, 4294967295, %v1361_v31  ;;  %vm1148_vm0 = vmand %vm195_vm1, %vm213_vm3  ;;  %vm192_vm1 = vcmp.ge.s32.totalorder %v173_v32, %v1041_v8  ;;  %vm210_vm3 = vcmp.lt.s32.totalorder %v173_v32, %v1046_v11 }
  0x13   :  { %871 = vmatprep.subr.mxu1 %v967_v2  ;;  %v1364_v33 = vsel %vm1148_vm0, 4294967295, %v1363_v33 }
  0x14   :  { %872 = vmatpush3.msk.msra.mxu1 %vm1104_vm5, %v974_v16  ;;  %vm31_vm5 = vcmp.lt.s32.totalorder %v27_v39, 18 }
  0x15   :  { %873 = vmatprep.subr.mxu1 %v967_v2 }
  0x16   :  { %874 = vmatpush3.msk.msra.mxu1 %vm1115_vm10, %v974_v16  ;;  %vm30_vm10 = vcmp.ge.s32.totalorder %v27_v39, 2 }
  0x17   :  { %875 = vmatprep.subr.mxu1 %v967_v2  ;;  %vm32_vm2 = vmand %vm30_vm10, %vm31_vm5  ;;  %vm1375_vm5 = vmmov 0   ;;  %vm1380_vm10 = vnez %v1362_v31 }
  0x18   :  { %876 = vmatpush3.msk.msra.mxu1 %vm1126_vm15, %v974_v16  ;;  %vm1159_vm15 = vmand %vm194_vm6, %vm212_vm9  ;;  %vm191_vm6 = vcmp.ge.s32.totalorder %v172_v34, %v1041_v8  ;;  %vm209_vm9 = vcmp.lt.s32.totalorder %v172_v34, %v1046_v11  ;;  %v33_v46 = vsel %vm32_vm2, 1, %v968_v3  ;;  %vm92_vm2 = vcmask 162816  }
  0x19   :  { %877 = vmatprep.subr.mxu1 %v967_v2  ;;  %v1366_v35 = vsel %vm1159_vm15, 4294967295, %v1365_v35  ;;  %v37_v48 = vrot.slane %v33_v46, %v36_v40 }
  0x1a   :  { %878 = vmatpush3.msk.msra.mxu1 %vm1137_vm4, %v974_v16  ;;  %vm1169_vm4 = vmand %vm193_vm12, %vm211_vm13  ;;  %vm54_vm13 = vcmp.ge.s32.totalorder %v27_v39, 4294967295 }
  0x1b   :  { %879 = vmatprep.subr.mxu1 %v967_v2  ;;  %v1368_v36 = vsel %vm1169_vm4, 4294967295, %v1367_v36  ;;  %vm1187_vm12 = vmand %vm191_vm6, %vm209_vm9  ;;  %vm43_vm6 = vcmp.lt.s32.totalorder %v27_v39, 17 }
  0x1c   :  { %880 = vmatpush3.msk.msra.mxu1 %vm1148_vm0, %v974_v16  ;;  %vm1179_vm0 = vmand %vm192_vm1, %vm210_vm3  ;;  %v1372_v38 = vsel %vm1187_vm12, 4294967295, %v1371_v38  ;;  %vm55_vm1 = vcmp.lt.s32.totalorder %v27_v39, 15  ;;  %vm42_vm3 = vcmp.ge.s32.totalorder %v27_v39, 1 }
  0x1d   :  { %881 = vmatprep.subr.mxu1 %v967_v2  ;;  %v1370_v37 = vsel %vm1179_vm0, 4294967295, %v1369_v37  ;;  %vm56_vm9 = vmand %vm54_vm13, %vm55_vm1 }
  0x1e   :  { %882 = vmatpush3.msk.msra.mxu1 %vm1159_vm15, %v974_v16  ;;  %vm66_vm15 = vcmp.ge.s32.totalorder %v27_v39, 4294967294  ;;  %v57_v41 = vsel %vm56_vm9, 1, %v968_v3  ;;  %vm1384_vm9 = vnez %v1370_v37 }
  0x1f   :  { %883 = vmatprep.subr.mxu1 %v967_v2  ;;  %v61_v43 = vrot.slane %v57_v41, %v36_v40 }
  0x20   :  { %884 = vmatpush3.msk.msra.mxu1 %vm1169_vm4, %v974_v16  ;;  %vm44_vm4 = vmand %vm42_vm3, %vm43_vm6  ;;  %vm1207_vm6 = vcmp.eq.s32.totalorder %v37_v48, 1 }
  0x21   :  { %885 = vmatprep.subr.mxu1 %v967_v2  ;;  %v45_v42 = vsel %vm44_vm4, 1, %v968_v3  ;;  %vm62_vm13 = vcmp.eq.s32.totalorder %v61_v43, 1  ;;  %vm1382_vm4 = vnez %v1366_v35 }
  0x22   :  { %886 = vmatpush3.msk.msra.mxu1 %vm1179_vm0, %v974_v16  ;;  %vm67_vm0 = vcmp.lt.s32.totalorder %v27_v39, 14  ;;  %v49_v44 = vrot.slane %v45_v42, %v36_v40 }
  0x23   :  { %887 = vmatprep.subr.mxu1 %v967_v2 }
  0x24   :  { %888 = vmatpush3.msk.msra.mxu1 %vm1187_vm12, %v974_v16  ;;  %vm68_vm12 = vmand %vm66_vm15, %vm67_vm0  ;;  %vm50_vm1 = vcmp.eq.s32.totalorder %v49_v44, 1  ;;  %vm82_vm0 = vcmask 1043456   ;;  %vm1381_vm15 = vnez %v1364_v33 }
  0x25   :  { %889 = vmatprep.subr.mxu1 %v967_v2  ;;  %v69_v45 = vsel %vm68_vm12, 1, %v968_v3  ;;  %vm1383_vm12 = vnez %v1368_v36 }
  0x26   :  { %v73_v47 = vrot.slane %v69_v45, %v36_v40 }
  0x28   :  { %vm74_vm3 = vcmp.eq.s32.totalorder %v73_v47, 1 }
  0x74   :  { %v53_v49 = vpop.permute.xlu0 %52  ;;  %v41_v50 = vpop.permute.xlu1 %40 }
  0x75   :  { %v63_v51 = vsel %vm62_vm13, %v53_v49, 0.0  ;;  %v51_v52 = vsel %vm50_vm1, %v41_v50, 0.0  ;;  %vm1385_vm13 = vnez %v1372_v38  ;;  %vm190_vm1 = vcmp.ge.s32.totalorder %v171_v63, %v1041_v8 }
  0x76   :  { %v80_v53 = vrot.slane %v63_v51, 4  ;;  %v77_v57 = vrot.slane %v51_v52, 4 }
  0x78   :  { %v65_v55 = vpop.permute.xlu0 %64  ;;  %v29_v56 = vpop.permute.xlu1 %28  ;;  %v84_v60 = vsel %vm82_vm0, %v1018_v1, %v80_v53 }
  0x79   :  { %v75_v58 = vsel %vm74_vm3, %v65_v55, 0.0  ;;  %v39_v59 = vsel %vm1207_vm6, %v29_v56, 0.0  ;;  %vm208_vm3 = vcmp.lt.s32.totalorder %v171_v63, %v1046_v11 }
  0x7a   :  { %853 = vmatpush3.msk.msra.mxu0 %vm82_vm0, %v75_v58  ;;  %v83_v62 = vsel %vm82_vm0, %v39_v59, %v77_v57  ;;  %vm224_vm6 = vmand %vm190_vm1, %vm208_vm3  ;;  %vm189_vm0 = vcmp.ge.s32.totalorder %v1024_v4, %v1041_v8  ;;  %v570_v8 = vld [vmem:[%s1329_s3] sm:$0xff] }
  0x7b   :  { %854 = vmatprep.subr.mxu0 %v967_v2  ;;  %890 = vmatpush3.msk.msra.mxu1 %vm224_vm6, %v974_v16 }
  0x7c   :  { %855 = vmatpush3.msra.mxu0 %v84_v60  ;;  %891 = vmatprep.subr.mxu1 %v967_v2 }
  0x7d   :  { %856 = vmatprep.subr.mxu0 %v967_v2  ;;  %573 = vperm.xlu1 %960, %v570_v8  }
  0x7e   :  { %857 = vmatpush3.msra.mxu0 %v83_v62 }
  0x7f   :  { %859 = vmatmul.mubr.msk.f32.vlgmr.msra.gmra.mxu0 %vm92_vm2, %v85_v61  ;;  %896 = vmatprep.subr.mxu0 %v967_v2  ;;  %vm207_vm2 = vcmp.lt.s32.totalorder %v1024_v4, %v1046_v11 }
  0x80   :  { %897 = vmatpush3.msk.msra.mxu0 %vm1056_vm7, %v974_v16  ;;  %928 = vmatprep.mubr.msk.f32.mxu0 %vm1375_vm5, %v967_v2  ;;  %vm1376_vm7 = vnez %v1354_v23 }
  0x81   :  { %898 = vmatprep.subr.mxu0 %v967_v2  ;;  %581 = vperm.xlu1 %960, %v577_v9  }
  0x82   :  { %899 = vmatpush3.msk.msra.mxu0 %vm1063_vm8, %v974_v16  ;;  %vm1377_vm8 = vnez %v1356_v25 }
  0x83   :  { %900 = vmatprep.subr.mxu0 %v967_v2 }
  0x84   :  { %901 = vmatpush3.msk.msra.mxu0 %vm1071_vm11, %v974_v16  ;;  %vm1378_vm11 = vnez %v1358_v27 }
  0x85   :  { %902 = vmatprep.subr.mxu0 %v967_v2  ;;  %v90_v0 = vpop.permute.xlu0 %89 }
  0x86   :  { %903 = vmatpush3.msk.msra.mxu0 %vm1082_vm14, %v974_v16  ;;  %vm1379_vm14 = vnez %v1360_v29 }
  0x87   :  { %904 = vmatprep.subr.mxu0 %v967_v2 }
  0x88   :  { %905 = vmatpush3.msk.msra.mxu0 %vm1376_vm7, %v974_v16  ;;  %vm223_vm7 = vmand %vm189_vm0, %vm207_vm2 }
  0x89   :  { %906 = vmatprep.subr.mxu0 %v967_v2  ;;  %892 = vmatpush3.msk.msra.mxu1 %vm223_vm7, %v974_v16 }
  0x8a   :  { %907 = vmatpush3.msk.msra.mxu0 %vm1377_vm8, %v974_v16  ;;  %931 = vmatprep.subr.mxu1 %v967_v2  ;;  %vm421_vm8 = vcmask 64512  }
  0x8b   :  { %908 = vmatprep.subr.mxu0 %v967_v2 }
  0x8c   :  { %909 = vmatpush3.msk.msra.mxu0 %vm1378_vm11, %v974_v16  ;;  %vm272_vm11 = vcmp.ge.s32.totalorder %v1031_v6, %v271_v17 }
  0x8d   :  { %910 = vmatprep.subr.mxu0 %v967_v2 }
  0x8e   :  { %911 = vmatpush3.msk.msra.mxu0 %vm1379_vm14, %v974_v16  ;;  %vm275_vm14 = vcmp.lt.s32.totalorder %v1031_v6, %v274_v18 }
  0x8f   :  { %912 = vmatprep.subr.mxu0 %v967_v2 }
  0x90   :  { %913 = vmatpush3.msk.msra.mxu0 %vm1380_vm10, %v974_v16  ;;  %vm276_vm10 = vmand %vm272_vm11, %vm275_vm14 }
  0x91   :  { %914 = vmatprep.subr.mxu0 %v967_v2 }
  0x92   :  { %915 = vmatpush3.msk.msra.mxu0 %vm1381_vm15, %v974_v16 }
  0x93   :  { %916 = vmatprep.subr.mxu0 %v967_v2 }
  0x94   :  { %917 = vmatpush3.msk.msra.mxu0 %vm1382_vm4, %v974_v16 }
  0x95   :  { %918 = vmatprep.subr.mxu0 %v967_v2 }
  0x96   :  { %919 = vmatpush3.msk.msra.mxu0 %vm1383_vm12, %v974_v16 }
  0x97   :  { %920 = vmatprep.subr.mxu0 %v967_v2 }
  0x98   :  { %921 = vmatpush3.msk.msra.mxu0 %vm1384_vm9, %v974_v16 }
  0x99   :  { %922 = vmatprep.subr.mxu0 %v967_v2 }
  0x9a   :  { %923 = vmatpush3.msk.msra.mxu0 %vm1385_vm13, %v974_v16 }
  0x9b   :  { %924 = vmatprep.subr.mxu0 %v967_v2 }
  0x9c   :  { %925 = vmatpush3.msk.msra.mxu0 %vm224_vm6, %v974_v16 }
  0x9d   :  { %926 = vmatprep.subr.mxu0 %v967_v2 }
  0x9e   :  { %927 = vmatpush3.msk.msra.mxu0 %vm223_vm7, %v974_v16 }
  0x9f   :  { %941 = vmatprep.subr.mxu0 %v967_v2 }
  0xf8   :  { %v574_v4 = vpop.permute.xlu1 %573 }
  0xfc   :  { %v582_v6 = vpop.permute.xlu1 %581 }
 0x13f   :  { %v165_v1 = vpop.f32.mrf.mxu0 }
 0x140   :  { %v166_v3 = vadd.f32 %v165_v1, %v90_v0 }
 0x141   :  { %v860_v5 = vpop.f32.mrf.mxu0 }
 0x142   :  { %v350_v7 = vmul.f32 %v166_v3, %v166_v3  ;;  %894 = vmatmul.mubr.f32.vlgmr.msra.gmra.mxu1 %v166_v3 }
 0x143   :  { %933 = vmatprep.mubr.msk.f32.mxu1 %vm1375_vm5, %v967_v2 }
 0x144   :  { %929 = vmatmul.mubr.f32.vlgmr.msra.gmra.mxu0 %v350_v7 }
 0x145   :  { %943 = vmatprep.mubr.msk.f32.mxu0 %vm1375_vm5, %v967_v2  ;;  %942 = vmatpush3.msk.msra.mxu0 %vm276_vm10, %v974_v16 }
 0x202   :  { %v346_v11 = vpop.f32.mrf.mxu1 }
 0x203   :  { %932 = vmatpush3.msra.mxu1 %v346_v11 }
 0x204   :  { %v895_v12 = vpop.f32.mrf.mxu1  ;;  %v417_v13 = vpop.f32.mrf.mxu0  ;;  %934 = vmatmul.mubr.msk.f32.vlgmr.msra.gmra.mxu1 %vm421_vm8, %v279_v10  ;;  %936 = vmatprep.subr.mxu1 %v967_v2 }
 0x205   :  { %937 = vmatpush3.msra.mxu1 %v417_v13  ;;  %938 = vmatprep.mubr.msk.f32.mxu1 %vm1375_vm5, %v967_v2 }
 0x206   :  { %v930_v14 = vpop.f32.mrf.mxu0  ;;  %946 = vmatprep.subr.mxu1 %v967_v2 }
 0x208   :  { %939 = vmatmul.mubr.msk.f32.vlgmr.msra.gmra.mxu1 %vm421_vm8, %v279_v10 }
 0x209   :  { %948 = vmatprep.mubr.msk.f32.mxu1 %vm1375_vm5, %v967_v2  ;;  %947 = vmatpush3.msk.msra.mxu1 %vm276_vm10, %v974_v16 }
 0x2c4   :  { %v491_v19 = vpop.f32.mrf.mxu1 }
 0x2c5   :  { %v565_v21 = vmul.f32 %v491_v19, %v491_v19 }
 0x2c6   :  { %v935_v20 = vpop.f32.mrf.mxu1 }
 0x2c8   :  { %v561_v22 = vpop.f32.mrf.mxu1 }
 0x2c9   :  { %v566_v23 = vsub.f32 %v561_v22, %v565_v21 }
 0x2ca   :  { %v940_v2 = vpop.f32.mrf.mxu1 }
 0x2cb   :  { %v567_v24 = vmax.f32 %v566_v23, 0.0 }
 0x2cd   :  { %v568_v25 = vadd.f32 1e-05, %v567_v24 }
 0x2cf   :  { %961 = vrsqrt.f32 %v568_v25 }
 0x2dc   :  { %v962_v26 = vpop.eup %961 }
 0x2dd   :  { %v576_v27 = vmul.f32 %v962_v26, %v574_v4 }
 0x2df   :  { %v578_v28 = vmul.f32 %v576_v27, %v491_v19  ;;  %944 = vmatmul.mubr.msk.f32.vlgmr.msra.gmra.mxu0 %vm421_vm8, %v576_v27 }
 0x2e1   :  { %v584_v29 = vsub.f32 %v582_v6, %v578_v28 }
 0x2e3   :  { %949 = vmatmul.mubr.msk.f32.vlgmr.msra.gmra.mxu1 %vm421_vm8, %v584_v29 }
 0x39f   :  { %v654_v16 = vpop.f32.mrf.mxu0 }
 0x3a0   :  { %v731_v31 = vmul.f32 %v654_v16, %v166_v3 }
 0x3a1   :  { %v945_v30 = vpop.f32.mrf.mxu0 }
 0x3a3   :  { %v727_v32 = vpop.f32.mrf.mxu1 }
 0x3a4   :  { %v732_v33 = vadd.f32 %v731_v31, %v727_v32 }
 0x3a5   :  { %v950_v34 = vpop.f32.mrf.mxu1 }
 0x3a6   :  { %v733_v35 = vmin.f32 %v732_v33, 20.0  ;;  %vm738_vm5 = vcmp.gt.f32.partialorder %v732_v33, 20.0 }
 0x3a8   :  { %v734_v36 = vmul.f32 1.442695, %v733_v35 }
 0x3aa   :  { %963 = vpow2.f32 %v734_v36 }
 0x3b7   :  { %v964_v37 = vpop.eup %963 }
 0x3b8   :  { %v736_v38 = vadd.f32 2.0, %v964_v37 }
 0x3ba   :  { %v737_v39 = vmul.f32 %v964_v37, %v736_v38 }
 0x3bc   :  { %v739_v40 = vadd.f32 2.0, %v737_v39 }
 0x3be   :  { %965 = vrcp.f32 %v739_v40 }
 0x3cb   :  { %v966_v41 = vpop.eup %965 }
 0x3cc   :  { %v741_v42 = vmul.f32 %v966_v41, %v737_v39 }
 0x3ce   :  { %v742_v43 = vmul.f32 %v741_v42, %v732_v33 }
 0x3d0   :  { %v743_v44 = vsel %vm738_vm5, %v732_v33, %v742_v43 }
 0x3d1   :  { %744 = vst [vmem:[%s1332_s7] sm:$0xff] %v743_v44 }

</bundles_post_ra>
